<compile_context>
chip_gen: v7x
topology: tpu7x:2x2x1
jax: 0.10.0
libtpu: 0.0.40
codegen_flags: <defaults>
</compile_context>

<pallas_src>
import functools

import jax
import jax.numpy as jnp
from jax import lax
from jax.experimental import pallas as pl
from jax.experimental.pallas import tpu as pltpu

_LANE = 128          # batch elements per sublane row (vreg lane width)
_CHUNK = 32          # in-kernel sublane chunk: bounds live vregs; mult of 8/16/32
_MAX_TB_SUB = 1024   # rows per grid step: 1024 x 128 i32 = 512 KiB input tile
_N_ACC = 4           # independent select chains to fill the 4 VALU slots
_MAX_SMEM_STATES = 4096  # 1-D f32[N] in SMEM pads to next_pow2(4N) bytes


def _round_up(x, m):
    return -(-x // m) * m


def _round_down(x, m):
    return (x // m) * m


def _lookup_kernel(state_ref, value_ref, out_ref, *, n_states, chunk, n_acc,
                   steps, unroll):
    """Per-tile gather: out[r, l] = value[state[r, l]].

    state_ref: (tb_sub, 128) int32 VMEM  (lane-dense batch tile)
    value_ref: (n_states,)   f32   SMEM  (whole table, scalar-indexed)
    out_ref:   (tb_sub, 128) f32   VMEM  (lane-dense output tile)
    """
    tb_sub = state_ref.shape[0]
    n_chunks = tb_sub // chunk
    out_dtype = out_ref.dtype
    needs_clamp = n_acc * steps > n_states

    def process_chunk(r0):
        idx = state_ref[pl.ds(r0, chunk), :]
        zero = jnp.zeros(idx.shape, dtype=out_dtype)

        def body(s, accs):
            new = []
            for k in range(n_acc):
                n = s + k * steps              # accumulator k owns [k*steps, (k+1)*steps)
                if needs_clamp and k == n_acc - 1:
                    nv = jnp.minimum(n, n_states - 1)   # keep SMEM read in bounds
                else:
                    nv = n
                v = value_ref[nv]              # scalar SMEM read (scalar unit)
                # Compare against the *unclamped* n: n >= n_states never matches
                # a valid index, so the clamped read cannot double count.
                new.append(jnp.where(idx == n, v, accs[k]))
            return tuple(new)

        accs = lax.fori_loop(0, steps, body, (zero,) * n_acc, unroll=unroll)
        res = accs[0]
        for a in accs[1:]:
            res = res + a                      # each element matches exactly one state -> exact
        out_ref[pl.ds(r0, chunk), :] = res

    if n_chunks == 1:
        process_chunk(0)
    else:
        # Non-unrolled chunk loop bounds vreg live ranges for big tiles.
        @pl.loop(0, n_chunks)
        def _(c):
            process_chunk(pl.multiple_of(c * chunk, chunk))


def tabular_critic_forward(value: jax.Array, state: jax.Array) -> jax.Array:
    """Pallas equivalent of torch.index_select(value, 0, state)."""
    assert value.ndim == 1 and state.ndim == 1
    n_states = int(value.shape[0])
    batch = int(state.shape[0])

    if n_states > _MAX_SMEM_STATES:
        # TODO(synk): fall back to a VMEM-resident table + tiled gather / one-hot
        # MXU matmul path for large tables instead of the SMEM select loop.
        raise NotImplementedError("TabularCritic Pallas kernel caps n_states at 4096")

    # ---- lane-dense batch layout: (rows, 128) int32 --------------------------
    rows = pl.cdiv(batch, _LANE)

    if rows <= _CHUNK:
        # Small batch: a single block exactly covering the (few-row) array; the
        # pad is at most 8*128 elements, i.e. negligible.
        rows_p = _round_up(rows, 8)
        tb_sub = rows_p
        chunk = tb_sub
    else:
        # Large batch: pad only to the next multiple of 128 elements (zero-copy
        # when already aligned); the ragged last grid block is handled by
        # Pallas's masked boundary-block reads/writes.
        rows_p = rows
        tb_sub = min(_MAX_TB_SUB, _round_down(rows, _CHUNK))
        chunk = _CHUNK

    b_pad = rows_p * _LANE
    state_i32 = state.astype(jnp.int32)
    if b_pad != batch:
        # Pad with index 0 (always in range); padded outputs are sliced off below.
        state_i32 = jnp.pad(state_i32, (0, b_pad - batch))
    state_2d = state_i32.reshape(rows_p, _LANE)

    grid = (pl.cdiv(rows_p, tb_sub),)

    # ---- select-loop shape: n_acc independent chains over disjoint ranges ----
    n_acc = max(1, min(_N_ACC, n_states))
    steps = pl.cdiv(n_states, n_acc)
    unroll = steps if steps <= 16 else 8       # full unroll for small tables

    tile_bytes = tb_sub * _LANE * (4 + jnp.dtype(value.dtype).itemsize)
    vmem_limit = int(max(16 << 20, 4 * tile_bytes + (2 << 20)))

    out2d = pl.pallas_call(
        functools.partial(_lookup_kernel, n_states=n_states, chunk=chunk,
                          n_acc=n_acc, steps=steps, unroll=unroll),
        out_shape=jax.ShapeDtypeStruct((rows_p, _LANE), value.dtype),
        grid=grid,
        in_specs=[
            # batch-index tile, lane-dense, double-buffered across the grid
            pl.BlockSpec((tb_sub, _LANE), lambda i: (i, 0)),
            # whole value table resident in SMEM (scalar-indexed)
            pl.BlockSpec(memory_space=pltpu.MemorySpace.SMEM),
        ],
        out_specs=pl.BlockSpec((tb_sub, _LANE), lambda i: (i, 0)),
        compiler_params=pltpu.CompilerParams(
            # TODO(synk): on v7x use pltpu.CORE_PARALLEL on the batch axis to
            # split the grid across both TensorCores; plain "parallel" is kept
            # here because it is the safe choice on single-TC v5e/v6e.
            dimension_semantics=("parallel",),
            vmem_limit_bytes=vmem_limit,
        ),
    )(state_2d, value)

    out = out2d.reshape(-1)
    return out if b_pad == batch else out[:batch]


if __name__ == "__main__":
    key = jax.random.PRNGKey(0)
    k_val, k_idx, k_val2, k_idx2 = jax.random.split(key, 4)

    # --- primary small example (matches the module: value (32,), state (8,)) ---
    n_states = 32
    batch = 8
    value = jax.random.normal(k_val, (n_states,), dtype=jnp.float32)
    state = jax.random.randint(k_idx, (batch,), 0, n_states, dtype=jnp.int32)

    out = jax.block_until_ready(tabular_critic_forward(value, state))
    ref = jnp.take(value, state, axis=0)
    assert out.shape == (batch,)
    assert jnp.allclose(out, ref), (out, ref)

    # --- secondary sanity check: exercises the chunk loop, multi-accumulator
    #     clamp path, and the lane-tail pad/slice (still small & fast) ---------
    n_states2 = 37
    batch2 = 16334
    value2 = jax.random.normal(k_val2, (n_states2,), dtype=jnp.float32)
    state2 = jax.random.randint(k_idx2, (batch2,), 0, n_states2, dtype=jnp.int32)

    out2 = jax.block_until_ready(tabular_critic_forward(value2, state2))
    ref2 = jnp.take(value2, state2, axis=0)
    assert out2.shape == (batch2,)
    assert jnp.allclose(out2, ref2)

    print("KERNEL_OK")
</pallas_src>

<mosaic_0001>
module attributes {stable_mosaic.version = 11 : i64} {
  func.func @_lookup_kernel(%arg0: i32, %arg1: memref<8x128xi32, #tpu.memory_space<vmem>>, %arg2: memref<32xf32, #tpu.memory_space<smem>>, %arg3: memref<8x128xf32, #tpu.memory_space<vmem>>) attributes {dimension_semantics = [#tpu.dimension_semantics<parallel>], iteration_bounds = array<i64: 1>, scalar_prefetch = 0 : i64, scratch_operands = 0 : i64, tpu.core_type = #tpu.core_type<tc>, window_params = [{transform_indices = @transform_0, window_bounds = array<i64: 8, 128>}, {transform_indices = @transform_1, window_bounds = array<i64: 32>}, {transform_indices = @transform_2, window_bounds = array<i64: 8, 128>}]} {
    %c0 = arith.constant 0 : index
    %c0_0 = arith.constant 0 : index
    %0 = vector.load %arg1[%c0, %c0_0] : memref<8x128xi32, #tpu.memory_space<vmem>>, vector<8x128xi32>
    %cst = arith.constant 0.000000e+00 : f32
    %1 = vector.broadcast %cst : f32 to vector<8x128xf32>
    %c0_i32 = arith.constant 0 : i32
    %c0_i32_1 = arith.constant 0 : i32
    %2 = arith.addi %c0_i32, %c0_i32_1 : i32
    %3 = arith.index_cast %2 : i32 to index
    %4 = memref.load %arg2[%3] : memref<32xf32, #tpu.memory_space<smem>>
    %5 = vector.broadcast %2 : i32 to vector<8x128xi32>
    %6 = arith.cmpi eq, %0, %5 : vector<8x128xi32>
    %7 = vector.broadcast %4 : f32 to vector<8x128xf32>
    %8 = arith.select %6, %7, %1 : vector<8x128xi1>, vector<8x128xf32>
    %c8_i32 = arith.constant 8 : i32
    %9 = arith.addi %c0_i32, %c8_i32 : i32
    %10 = arith.index_cast %9 : i32 to index
    %11 = memref.load %arg2[%10] : memref<32xf32, #tpu.memory_space<smem>>
    %12 = vector.broadcast %9 : i32 to vector<8x128xi32>
    %13 = arith.cmpi eq, %0, %12 : vector<8x128xi32>
    %14 = vector.broadcast %11 : f32 to vector<8x128xf32>
    %15 = arith.select %13, %14, %1 : vector<8x128xi1>, vector<8x128xf32>
    %c16_i32 = arith.constant 16 : i32
    %16 = arith.addi %c0_i32, %c16_i32 : i32
    %17 = arith.index_cast %16 : i32 to index
    %18 = memref.load %arg2[%17] : memref<32xf32, #tpu.memory_space<smem>>
    %19 = vector.broadcast %16 : i32 to vector<8x128xi32>
    %20 = arith.cmpi eq, %0, %19 : vector<8x128xi32>
    %21 = vector.broadcast %18 : f32 to vector<8x128xf32>
    %22 = arith.select %20, %21, %1 : vector<8x128xi1>, vector<8x128xf32>
    %c24_i32 = arith.constant 24 : i32
    %23 = arith.addi %c0_i32, %c24_i32 : i32
    %24 = arith.index_cast %23 : i32 to index
    %25 = memref.load %arg2[%24] : memref<32xf32, #tpu.memory_space<smem>>
    %26 = vector.broadcast %23 : i32 to vector<8x128xi32>
    %27 = arith.cmpi eq, %0, %26 : vector<8x128xi32>
    %28 = vector.broadcast %25 : f32 to vector<8x128xf32>
    %29 = arith.select %27, %28, %1 : vector<8x128xi1>, vector<8x128xf32>
    %c1_i32 = arith.constant 1 : i32
    %c0_i32_2 = arith.constant 0 : i32
    %30 = arith.addi %c1_i32, %c0_i32_2 : i32
    %31 = arith.index_cast %30 : i32 to index
    %32 = memref.load %arg2[%31] : memref<32xf32, #tpu.memory_space<smem>>
    %33 = vector.broadcast %30 : i32 to vector<8x128xi32>
    %34 = arith.cmpi eq, %0, %33 : vector<8x128xi32>
    %35 = vector.broadcast %32 : f32 to vector<8x128xf32>
    %36 = arith.select %34, %35, %8 : vector<8x128xi1>, vector<8x128xf32>
    %c8_i32_3 = arith.constant 8 : i32
    %37 = arith.addi %c1_i32, %c8_i32_3 : i32
    %38 = arith.index_cast %37 : i32 to index
    %39 = memref.load %arg2[%38] : memref<32xf32, #tpu.memory_space<smem>>
    %40 = vector.broadcast %37 : i32 to vector<8x128xi32>
    %41 = arith.cmpi eq, %0, %40 : vector<8x128xi32>
    %42 = vector.broadcast %39 : f32 to vector<8x128xf32>
    %43 = arith.select %41, %42, %15 : vector<8x128xi1>, vector<8x128xf32>
    %c16_i32_4 = arith.constant 16 : i32
    %44 = arith.addi %c1_i32, %c16_i32_4 : i32
    %45 = arith.index_cast %44 : i32 to index
    %46 = memref.load %arg2[%45] : memref<32xf32, #tpu.memory_space<smem>>
    %47 = vector.broadcast %44 : i32 to vector<8x128xi32>
    %48 = arith.cmpi eq, %0, %47 : vector<8x128xi32>
    %49 = vector.broadcast %46 : f32 to vector<8x128xf32>
    %50 = arith.select %48, %49, %22 : vector<8x128xi1>, vector<8x128xf32>
    %c24_i32_5 = arith.constant 24 : i32
    %51 = arith.addi %c1_i32, %c24_i32_5 : i32
    %52 = arith.index_cast %51 : i32 to index
    %53 = memref.load %arg2[%52] : memref<32xf32, #tpu.memory_space<smem>>
    %54 = vector.broadcast %51 : i32 to vector<8x128xi32>
    %55 = arith.cmpi eq, %0, %54 : vector<8x128xi32>
    %56 = vector.broadcast %53 : f32 to vector<8x128xf32>
    %57 = arith.select %55, %56, %29 : vector<8x128xi1>, vector<8x128xf32>
    %c2_i32 = arith.constant 2 : i32
    %c0_i32_6 = arith.constant 0 : i32
    %58 = arith.addi %c2_i32, %c0_i32_6 : i32
    %59 = arith.index_cast %58 : i32 to index
    %60 = memref.load %arg2[%59] : memref<32xf32, #tpu.memory_space<smem>>
    %61 = vector.broadcast %58 : i32 to vector<8x128xi32>
    %62 = arith.cmpi eq, %0, %61 : vector<8x128xi32>
    %63 = vector.broadcast %60 : f32 to vector<8x128xf32>
    %64 = arith.select %62, %63, %36 : vector<8x128xi1>, vector<8x128xf32>
    %c8_i32_7 = arith.constant 8 : i32
    %65 = arith.addi %c2_i32, %c8_i32_7 : i32
    %66 = arith.index_cast %65 : i32 to index
    %67 = memref.load %arg2[%66] : memref<32xf32, #tpu.memory_space<smem>>
    %68 = vector.broadcast %65 : i32 to vector<8x128xi32>
    %69 = arith.cmpi eq, %0, %68 : vector<8x128xi32>
    %70 = vector.broadcast %67 : f32 to vector<8x128xf32>
    %71 = arith.select %69, %70, %43 : vector<8x128xi1>, vector<8x128xf32>
    %c16_i32_8 = arith.constant 16 : i32
    %72 = arith.addi %c2_i32, %c16_i32_8 : i32
    %73 = arith.index_cast %72 : i32 to index
    %74 = memref.load %arg2[%73] : memref<32xf32, #tpu.memory_space<smem>>
    %75 = vector.broadcast %72 : i32 to vector<8x128xi32>
    %76 = arith.cmpi eq, %0, %75 : vector<8x128xi32>
    %77 = vector.broadcast %74 : f32 to vector<8x128xf32>
    %78 = arith.select %76, %77, %50 : vector<8x128xi1>, vector<8x128xf32>
    %c24_i32_9 = arith.constant 24 : i32
    %79 = arith.addi %c2_i32, %c24_i32_9 : i32
    %80 = arith.index_cast %79 : i32 to index
    %81 = memref.load %arg2[%80] : memref<32xf32, #tpu.memory_space<smem>>
    %82 = vector.broadcast %79 : i32 to vector<8x128xi32>
    %83 = arith.cmpi eq, %0, %82 : vector<8x128xi32>
    %84 = vector.broadcast %81 : f32 to vector<8x128xf32>
    %85 = arith.select %83, %84, %57 : vector<8x128xi1>, vector<8x128xf32>
    %c3_i32 = arith.constant 3 : i32
    %c0_i32_10 = arith.constant 0 : i32
    %86 = arith.addi %c3_i32, %c0_i32_10 : i32
    %87 = arith.index_cast %86 : i32 to index
    %88 = memref.load %arg2[%87] : memref<32xf32, #tpu.memory_space<smem>>
    %89 = vector.broadcast %86 : i32 to vector<8x128xi32>
    %90 = arith.cmpi eq, %0, %89 : vector<8x128xi32>
    %91 = vector.broadcast %88 : f32 to vector<8x128xf32>
    %92 = arith.select %90, %91, %64 : vector<8x128xi1>, vector<8x128xf32>
    %c8_i32_11 = arith.constant 8 : i32
    %93 = arith.addi %c3_i32, %c8_i32_11 : i32
    %94 = arith.index_cast %93 : i32 to index
    %95 = memref.load %arg2[%94] : memref<32xf32, #tpu.memory_space<smem>>
    %96 = vector.broadcast %93 : i32 to vector<8x128xi32>
    %97 = arith.cmpi eq, %0, %96 : vector<8x128xi32>
    %98 = vector.broadcast %95 : f32 to vector<8x128xf32>
    %99 = arith.select %97, %98, %71 : vector<8x128xi1>, vector<8x128xf32>
    %c16_i32_12 = arith.constant 16 : i32
    %100 = arith.addi %c3_i32, %c16_i32_12 : i32
    %101 = arith.index_cast %100 : i32 to index
    %102 = memref.load %arg2[%101] : memref<32xf32, #tpu.memory_space<smem>>
    %103 = vector.broadcast %100 : i32 to vector<8x128xi32>
    %104 = arith.cmpi eq, %0, %103 : vector<8x128xi32>
    %105 = vector.broadcast %102 : f32 to vector<8x128xf32>
    %106 = arith.select %104, %105, %78 : vector<8x128xi1>, vector<8x128xf32>
    %c24_i32_13 = arith.constant 24 : i32
    %107 = arith.addi %c3_i32, %c24_i32_13 : i32
    %108 = arith.index_cast %107 : i32 to index
    %109 = memref.load %arg2[%108] : memref<32xf32, #tpu.memory_space<smem>>
    %110 = vector.broadcast %107 : i32 to vector<8x128xi32>
    %111 = arith.cmpi eq, %0, %110 : vector<8x128xi32>
    %112 = vector.broadcast %109 : f32 to vector<8x128xf32>
    %113 = arith.select %111, %112, %85 : vector<8x128xi1>, vector<8x128xf32>
    %c4_i32 = arith.constant 4 : i32
    %c0_i32_14 = arith.constant 0 : i32
    %114 = arith.addi %c4_i32, %c0_i32_14 : i32
    %115 = arith.index_cast %114 : i32 to index
    %116 = memref.load %arg2[%115] : memref<32xf32, #tpu.memory_space<smem>>
    %117 = vector.broadcast %114 : i32 to vector<8x128xi32>
    %118 = arith.cmpi eq, %0, %117 : vector<8x128xi32>
    %119 = vector.broadcast %116 : f32 to vector<8x128xf32>
    %120 = arith.select %118, %119, %92 : vector<8x128xi1>, vector<8x128xf32>
    %c8_i32_15 = arith.constant 8 : i32
    %121 = arith.addi %c4_i32, %c8_i32_15 : i32
    %122 = arith.index_cast %121 : i32 to index
    %123 = memref.load %arg2[%122] : memref<32xf32, #tpu.memory_space<smem>>
    %124 = vector.broadcast %121 : i32 to vector<8x128xi32>
    %125 = arith.cmpi eq, %0, %124 : vector<8x128xi32>
    %126 = vector.broadcast %123 : f32 to vector<8x128xf32>
    %127 = arith.select %125, %126, %99 : vector<8x128xi1>, vector<8x128xf32>
    %c16_i32_16 = arith.constant 16 : i32
    %128 = arith.addi %c4_i32, %c16_i32_16 : i32
    %129 = arith.index_cast %128 : i32 to index
    %130 = memref.load %arg2[%129] : memref<32xf32, #tpu.memory_space<smem>>
    %131 = vector.broadcast %128 : i32 to vector<8x128xi32>
    %132 = arith.cmpi eq, %0, %131 : vector<8x128xi32>
    %133 = vector.broadcast %130 : f32 to vector<8x128xf32>
    %134 = arith.select %132, %133, %106 : vector<8x128xi1>, vector<8x128xf32>
    %c24_i32_17 = arith.constant 24 : i32
    %135 = arith.addi %c4_i32, %c24_i32_17 : i32
    %136 = arith.index_cast %135 : i32 to index
    %137 = memref.load %arg2[%136] : memref<32xf32, #tpu.memory_space<smem>>
    %138 = vector.broadcast %135 : i32 to vector<8x128xi32>
    %139 = arith.cmpi eq, %0, %138 : vector<8x128xi32>
    %140 = vector.broadcast %137 : f32 to vector<8x128xf32>
    %141 = arith.select %139, %140, %113 : vector<8x128xi1>, vector<8x128xf32>
    %c5_i32 = arith.constant 5 : i32
    %c0_i32_18 = arith.constant 0 : i32
    %142 = arith.addi %c5_i32, %c0_i32_18 : i32
    %143 = arith.index_cast %142 : i32 to index
    %144 = memref.load %arg2[%143] : memref<32xf32, #tpu.memory_space<smem>>
    %145 = vector.broadcast %142 : i32 to vector<8x128xi32>
    %146 = arith.cmpi eq, %0, %145 : vector<8x128xi32>
    %147 = vector.broadcast %144 : f32 to vector<8x128xf32>
    %148 = arith.select %146, %147, %120 : vector<8x128xi1>, vector<8x128xf32>
    %c8_i32_19 = arith.constant 8 : i32
    %149 = arith.addi %c5_i32, %c8_i32_19 : i32
    %150 = arith.index_cast %149 : i32 to index
    %151 = memref.load %arg2[%150] : memref<32xf32, #tpu.memory_space<smem>>
    %152 = vector.broadcast %149 : i32 to vector<8x128xi32>
    %153 = arith.cmpi eq, %0, %152 : vector<8x128xi32>
    %154 = vector.broadcast %151 : f32 to vector<8x128xf32>
    %155 = arith.select %153, %154, %127 : vector<8x128xi1>, vector<8x128xf32>
    %c16_i32_20 = arith.constant 16 : i32
    %156 = arith.addi %c5_i32, %c16_i32_20 : i32
    %157 = arith.index_cast %156 : i32 to index
    %158 = memref.load %arg2[%157] : memref<32xf32, #tpu.memory_space<smem>>
    %159 = vector.broadcast %156 : i32 to vector<8x128xi32>
    %160 = arith.cmpi eq, %0, %159 : vector<8x128xi32>
    %161 = vector.broadcast %158 : f32 to vector<8x128xf32>
    %162 = arith.select %160, %161, %134 : vector<8x128xi1>, vector<8x128xf32>
    %c24_i32_21 = arith.constant 24 : i32
    %163 = arith.addi %c5_i32, %c24_i32_21 : i32
    %164 = arith.index_cast %163 : i32 to index
    %165 = memref.load %arg2[%164] : memref<32xf32, #tpu.memory_space<smem>>
    %166 = vector.broadcast %163 : i32 to vector<8x128xi32>
    %167 = arith.cmpi eq, %0, %166 : vector<8x128xi32>
    %168 = vector.broadcast %165 : f32 to vector<8x128xf32>
    %169 = arith.select %167, %168, %141 : vector<8x128xi1>, vector<8x128xf32>
    %c6_i32 = arith.constant 6 : i32
    %c0_i32_22 = arith.constant 0 : i32
    %170 = arith.addi %c6_i32, %c0_i32_22 : i32
    %171 = arith.index_cast %170 : i32 to index
    %172 = memref.load %arg2[%171] : memref<32xf32, #tpu.memory_space<smem>>
    %173 = vector.broadcast %170 : i32 to vector<8x128xi32>
    %174 = arith.cmpi eq, %0, %173 : vector<8x128xi32>
    %175 = vector.broadcast %172 : f32 to vector<8x128xf32>
    %176 = arith.select %174, %175, %148 : vector<8x128xi1>, vector<8x128xf32>
    %c8_i32_23 = arith.constant 8 : i32
    %177 = arith.addi %c6_i32, %c8_i32_23 : i32
    %178 = arith.index_cast %177 : i32 to index
    %179 = memref.load %arg2[%178] : memref<32xf32, #tpu.memory_space<smem>>
    %180 = vector.broadcast %177 : i32 to vector<8x128xi32>
    %181 = arith.cmpi eq, %0, %180 : vector<8x128xi32>
    %182 = vector.broadcast %179 : f32 to vector<8x128xf32>
    %183 = arith.select %181, %182, %155 : vector<8x128xi1>, vector<8x128xf32>
    %c16_i32_24 = arith.constant 16 : i32
    %184 = arith.addi %c6_i32, %c16_i32_24 : i32
    %185 = arith.index_cast %184 : i32 to index
    %186 = memref.load %arg2[%185] : memref<32xf32, #tpu.memory_space<smem>>
    %187 = vector.broadcast %184 : i32 to vector<8x128xi32>
    %188 = arith.cmpi eq, %0, %187 : vector<8x128xi32>
    %189 = vector.broadcast %186 : f32 to vector<8x128xf32>
    %190 = arith.select %188, %189, %162 : vector<8x128xi1>, vector<8x128xf32>
    %c24_i32_25 = arith.constant 24 : i32
    %191 = arith.addi %c6_i32, %c24_i32_25 : i32
    %192 = arith.index_cast %191 : i32 to index
    %193 = memref.load %arg2[%192] : memref<32xf32, #tpu.memory_space<smem>>
    %194 = vector.broadcast %191 : i32 to vector<8x128xi32>
    %195 = arith.cmpi eq, %0, %194 : vector<8x128xi32>
    %196 = vector.broadcast %193 : f32 to vector<8x128xf32>
    %197 = arith.select %195, %196, %169 : vector<8x128xi1>, vector<8x128xf32>
    %c7_i32 = arith.constant 7 : i32
    %c0_i32_26 = arith.constant 0 : i32
    %198 = arith.addi %c7_i32, %c0_i32_26 : i32
    %199 = arith.index_cast %198 : i32 to index
    %200 = memref.load %arg2[%199] : memref<32xf32, #tpu.memory_space<smem>>
    %201 = vector.broadcast %198 : i32 to vector<8x128xi32>
    %202 = arith.cmpi eq, %0, %201 : vector<8x128xi32>
    %203 = vector.broadcast %200 : f32 to vector<8x128xf32>
    %204 = arith.select %202, %203, %176 : vector<8x128xi1>, vector<8x128xf32>
    %c8_i32_27 = arith.constant 8 : i32
    %205 = arith.addi %c7_i32, %c8_i32_27 : i32
    %206 = arith.index_cast %205 : i32 to index
    %207 = memref.load %arg2[%206] : memref<32xf32, #tpu.memory_space<smem>>
    %208 = vector.broadcast %205 : i32 to vector<8x128xi32>
    %209 = arith.cmpi eq, %0, %208 : vector<8x128xi32>
    %210 = vector.broadcast %207 : f32 to vector<8x128xf32>
    %211 = arith.select %209, %210, %183 : vector<8x128xi1>, vector<8x128xf32>
    %c16_i32_28 = arith.constant 16 : i32
    %212 = arith.addi %c7_i32, %c16_i32_28 : i32
    %213 = arith.index_cast %212 : i32 to index
    %214 = memref.load %arg2[%213] : memref<32xf32, #tpu.memory_space<smem>>
    %215 = vector.broadcast %212 : i32 to vector<8x128xi32>
    %216 = arith.cmpi eq, %0, %215 : vector<8x128xi32>
    %217 = vector.broadcast %214 : f32 to vector<8x128xf32>
    %218 = arith.select %216, %217, %190 : vector<8x128xi1>, vector<8x128xf32>
    %c24_i32_29 = arith.constant 24 : i32
    %219 = arith.addi %c7_i32, %c24_i32_29 : i32
    %220 = arith.index_cast %219 : i32 to index
    %221 = memref.load %arg2[%220] : memref<32xf32, #tpu.memory_space<smem>>
    %222 = vector.broadcast %219 : i32 to vector<8x128xi32>
    %223 = arith.cmpi eq, %0, %222 : vector<8x128xi32>
    %224 = vector.broadcast %221 : f32 to vector<8x128xf32>
    %225 = arith.select %223, %224, %197 : vector<8x128xi1>, vector<8x128xf32>
    %c8_i32_30 = arith.constant 8 : i32
    %226 = arith.addf %204, %211 : vector<8x128xf32>
    %227 = arith.addf %226, %218 : vector<8x128xf32>
    %228 = arith.addf %227, %225 : vector<8x128xf32>
    %c0_31 = arith.constant 0 : index
    %c0_32 = arith.constant 0 : index
    %229 = vector.load %arg3[%c0_31, %c0_32] : memref<8x128xf32, #tpu.memory_space<vmem>>, vector<8x128xf32>
    tpu.vector_store %arg3[%c0_31, %c0_32], %228 {strides = array<i32>} : memref<8x128xf32, #tpu.memory_space<vmem>>, vector<8x128xf32>,
    return
  }
  func.func @transform_0(%arg0: i32) -> (i32, i32) {
    %c0_i32 = arith.constant 0 : i32
    %c0_i32_0 = arith.constant 0 : i32
    return %arg0, %c0_i32 : i32, i32
  }
  func.func @transform_1(%arg0: i32) -> i32 {
    %c0_i32 = arith.constant 0 : i32
    %c0_i32_0 = arith.constant 0 : i32
    return %c0_i32 : i32
  }
  func.func @transform_2(%arg0: i32) -> (i32, i32) {
    %c0_i32 = arith.constant 0 : i32
    %c0_i32_0 = arith.constant 0 : i32
    return %arg0, %c0_i32 : i32, i32
  }
}

</mosaic_0001>

<bundles_post_ra>
// kernel: tpu_custom_call.1
= control target key start
LH: loop header
LB: loop body
LE: loop exit
PB: predicated region body
PF: predicated region fallthrough
CT: control target
= control target key end

     0   :  { %7 = vsyncpa [#allocation3], 0  ;;  %s478_s0 = inlined_call_operand.hbm [shape: s32[8,128], index: 0, kind: input, shape index: {}]   ;;  %s479_s1 = inlined_call_operand.vmem [shape: f32[32], index: 1, kind: input, shape index: {}]   ;;  %s480_s2 = inlined_call_operand.hbm [shape: f32[8,128], index: 2, kind: output, shape index: {}]  }
   0x1   :  { %8 = vsyncpa [#allocation5], 0 }
   0x2   :  { %9 = vsyncpa [#allocation4], 0  ;;  %s26_s11 = sshll.u32 %s479_s1, 4  ;;  %s282_s12 = smov [#allocation2]   ;;  %s27_s11 = int_to_ptr.vmem [resolvable:$true] %s26_s11 }
   0x3   :  { %s16_s13 = sshll.u32 %s282_s12, 4  ;;  %s220_s16 = scalar_lea.hbm %s478_s0, 128  ;;  %s17_s13 = int_to_ptr.vmem [resolvable:$true] %s16_s13 }
   0x4   :  { %p221_p0 = scmp.ne.s32.totalorder %s478_s0, %s220_s16  ;;  %p224_p1 = scmp.lt.u32.totalorder %s220_s16, %s478_s0 }
   0x6   :  { %p226_p2 = pnand %p224_p1, %p221_p0 }
   0x8   :  { %229 = shalt.err (!%p226_p2)
}
   0x9   :  { %s230_s21 = scalar_lea.vmem %s17_s13, 128  ;;  %p235_p4 = scmp.lt.s32.totalorder %s17_s13, %s17_s13 }
   0xa   :  { %p231_p3 = scmp.ne.s32.totalorder %s17_s13, %s230_s21  ;;  %p236_p5 = scmp.lt.s32.totalorder %s230_s21, %s230_s21 }
   0xc   :  { %p237_p6 = por %p236_p5, %p235_p4 }
   0xe   :  { %p238_p7 = pnand %p237_p6, %p231_p3 }
  0x10   :  { %241 = shalt.err (!%p238_p7)
}
  0x11   :  { %19 = dma.hbm_to_vmem [thread:$0]  %s478_s0, 128, %s17_s13, [#allocation3]  }
  0x12   :  { %s242_s23 = scalar_lea.vmem %s27_s11, 16  ;;  %p247_p9 = scmp.lt.s32.totalorder %s27_s11, %s27_s11 }
  0x13   :  { %p243_p8 = scmp.ne.s32.totalorder %s27_s11, %s242_s23  ;;  %p248_p10 = scmp.lt.s32.totalorder %s242_s23, %s242_s23 }
  0x15   :  { %p249_p11 = por %p248_p10, %p247_p9 }
  0x17   :  { %p250_p12 = pnand %p249_p11, %p243_p8 }
  0x19   :  { %253 = shalt.err (!%p250_p12)
}
  0x1a   :  { %s283_s24 = smov [#allocation6]  }
  0x1b   :  { %29 = dma.vmem_to_smem %s27_s11, 16, %s283_s24, [#allocation5]  }
  0x1c   :  { %276 = dma.done.wait [#allocation3], 128  }
  0x1d   :  { %277 = vsyncadd [#allocation3], 4294967168 }
  0x1e   :  { %278 = dma.done.wait [#allocation5], 16  }
  0x1f   :  { %279 = vsyncadd [#allocation5], 4294967280 }
  0x20   :  { %36 = sfence }
  0x21   :  { %v315_v0 = vld [vmem:[#allocation2] sm:$0xff]  ;;  %s38_s25 = sld [smem:[#allocation6]]  ;;  %s323_s28 = sld [smem:[#allocation6 + $0x1]] }
  0x22   :  { %s186_s26 = sld [smem:[#allocation6 + $0x8]]  ;;  %vm39_vm0 = vcmp.eq.s32.totalorder %v315_v0, 0  ;;  %vm43_vm1 = vcmp.eq.s32.totalorder %v315_v0, 8  ;;  %vm47_vm2 = vcmp.eq.s32.totalorder %v315_v0, 16  ;;  %vm51_vm3 = vcmp.eq.s32.totalorder %v315_v0, 24  ;;  %s327_s29 = sld [smem:[#allocation6 + $0x9]] }
  0x23   :  { %s187_s0 = sld [smem:[#allocation6 + $0x10]]  ;;  %vm55_vm4 = vcmp.eq.s32.totalorder %v315_v0, 1  ;;  %vm59_vm5 = vcmp.eq.s32.totalorder %v315_v0, 9  ;;  %s329_s30 = sld [smem:[#allocation6 + $0x11]]  ;;  %vm63_vm6 = vcmp.eq.s32.totalorder %v315_v0, 17  ;;  %vm67_vm7 = vcmp.eq.s32.totalorder %v315_v0, 25 }
  0x24   :  { %s321_s27 = sld [smem:[#allocation6 + $0x18]]  ;;  %s333_s3 = sld [smem:[#allocation6 + $0x19]]  ;;  %vm71_vm8 = vcmp.eq.s32.totalorder %v315_v0, 2  ;;  %vm75_vm9 = vcmp.eq.s32.totalorder %v315_v0, 10  ;;  %vm79_vm10 = vcmp.eq.s32.totalorder %v315_v0, 18  ;;  %vm83_vm11 = vcmp.eq.s32.totalorder %v315_v0, 26 }
  0x25   :  { %s335_s4 = sld [smem:[#allocation6 + $0x2]]  ;;  %s347_s8 = sld [smem:[#allocation6 + $0x3]]  ;;  %vm87_vm12 = vcmp.eq.s32.totalorder %v315_v0, 3  ;;  %vm91_vm13 = vcmp.eq.s32.totalorder %v315_v0, 11  ;;  %vm95_vm14 = vcmp.eq.s32.totalorder %v315_v0, 19  ;;  %vm99_vm15 = vcmp.eq.s32.totalorder %v315_v0, 27 }
  0x26   :  { %s339_s5 = sld [smem:[#allocation6 + $0xa]]  ;;  %s355_s9 = sld [smem:[#allocation6 + $0xb]] }
  0x27   :  { %s341_s6 = sld [smem:[#allocation6 + $0x12]]  ;;  %v40_v1 = vstv %s38_s25  ;;  %s357_s10 = sld [smem:[#allocation6 + $0x13]]  ;;  %v56_v8 = vstv %s323_s28 }
  0x28   :  { %v44_v2 = vstv %s186_s26  ;;  %s345_s7 = sld [smem:[#allocation6 + $0x1a]]  ;;  %v41_v3 = vsel %vm39_vm0, %v40_v1, 0.0  ;;  %s364_s11 = sld [smem:[#allocation6 + $0x1b]]  ;;  %v60_v11 = vstv %s327_s29  ;;  %vm103_vm0 = vcmp.eq.s32.totalorder %v315_v0, 4 }
  0x29   :  { %v45_v4 = vsel %vm43_vm1, %v44_v2, 0.0  ;;  %v48_v5 = vstv %s187_s0  ;;  %s366_s12 = sld [smem:[#allocation6 + $0x4]]  ;;  %v57_v10 = vsel %vm55_vm4, %v56_v8, %v41_v3  ;;  %v64_v12 = vstv %s329_s30  ;;  %s386_s16 = sld [smem:[#allocation6 + $0x5]] }
  0x2a   :  { %v49_v6 = vsel %vm47_vm2, %v48_v5, 0.0  ;;  %v52_v7 = vstv %s321_s27  ;;  %s374_s13 = sld [smem:[#allocation6 + $0xc]]  ;;  %v61_v13 = vsel %vm59_vm5, %v60_v11, %v45_v4  ;;  %v68_v15 = vstv %s333_s3  ;;  %s394_s17 = sld [smem:[#allocation6 + $0xd]] }
  0x2b   :  { %v53_v9 = vsel %vm51_vm3, %v52_v7, 0.0  ;;  %s376_s14 = sld [smem:[#allocation6 + $0x14]]  ;;  %v65_v14 = vsel %vm63_vm6, %v64_v12, %v49_v6  ;;  %v72_v16 = vstv %s335_s4  ;;  %s396_s18 = sld [smem:[#allocation6 + $0x15]]  ;;  %v88_v24 = vstv %s347_s8 }
  0x2c   :  { %s384_s15 = sld [smem:[#allocation6 + $0x1c]]  ;;  %v69_v17 = vsel %vm67_vm7, %v68_v15, %v53_v9  ;;  %v73_v18 = vsel %vm71_vm8, %v72_v16, %v57_v10  ;;  %v76_v19 = vstv %s339_s5  ;;  %s404_s19 = sld [smem:[#allocation6 + $0x1d]]  ;;  %v92_v27 = vstv %s355_s9 }
  0x2d   :  { %v80_v20 = vstv %s341_s6  ;;  %v77_v21 = vsel %vm75_vm9, %v76_v19, %v61_v13  ;;  %v89_v26 = vsel %vm87_vm12, %v88_v24, %v73_v18  ;;  %v96_v28 = vstv %s357_s10  ;;  %s412_s20 = sld [smem:[#allocation6 + $0x6]]  ;;  %s432_s23 = sld [smem:[#allocation6 + $0x7]] }
  0x2e   :  { %v81_v22 = vsel %vm79_vm10, %v80_v20, %v65_v14  ;;  %v84_v23 = vstv %s345_s7  ;;  %v93_v29 = vsel %vm91_vm13, %v92_v27, %v77_v21  ;;  %v100_v31 = vstv %s364_s11  ;;  %s420_s21 = sld [smem:[#allocation6 + $0xe]]  ;;  %s436_s24 = sld [smem:[#allocation6 + $0xf]] }
  0x2f   :  { %v85_v25 = vsel %vm83_vm11, %v84_v23, %v69_v17  ;;  %v97_v30 = vsel %vm95_vm14, %v96_v28, %v81_v22  ;;  %s422_s1 = sld [smem:[#allocation6 + $0x16]]  ;;  %v104_v33 = vstv %s366_s12  ;;  %vm107_vm1 = vcmp.eq.s32.totalorder %v315_v0, 12  ;;  %s438_s25 = sld [smem:[#allocation6 + $0x17]] }
  0x30   :  { %v101_v32 = vsel %vm99_vm15, %v100_v31, %v85_v25  ;;  %s427_s22 = sld [smem:[#allocation6 + $0x1e]]  ;;  %v105_v34 = vsel %vm103_vm0, %v104_v33, %v89_v26  ;;  %v108_v35 = vstv %s374_s13  ;;  %vm111_vm2 = vcmp.eq.s32.totalorder %v315_v0, 20  ;;  %s443_s26 = sld [smem:[#allocation6 + $0x1f]] }
  0x31   :  { %v112_v36 = vstv %s376_s14  ;;  %v109_v37 = vsel %vm107_vm1, %v108_v35, %v93_v29  ;;  %vm115_vm3 = vcmp.eq.s32.totalorder %v315_v0, 28  ;;  %vm119_vm4 = vcmp.eq.s32.totalorder %v315_v0, 5  ;;  %s284_s0 = smov [#allocation7]  }
  0x32   :  { %v113_v38 = vsel %vm111_vm2, %v112_v36, %v97_v30  ;;  %v116_v39 = vstv %s384_s15  ;;  %v120_v41 = vstv %s386_s16  ;;  %vm123_vm5 = vcmp.eq.s32.totalorder %v315_v0, 13  ;;  %s176_s27 = sshll.u32 %s284_s0, 4  ;;  %s177_s27 = int_to_ptr.vmem [resolvable:$true] %s176_s27 }
  0x33   :  { %v117_v40 = vsel %vm115_vm3, %v116_v39, %v101_v32  ;;  %v121_v42 = vsel %vm119_vm4, %v120_v41, %v105_v34  ;;  %v124_v43 = vstv %s394_s17  ;;  %vm127_vm6 = vcmp.eq.s32.totalorder %v315_v0, 21  ;;  %s254_s28 = scalar_lea.vmem %s177_s27, 128  ;;  %p259_p0 = scmp.lt.s32.totalorder %s177_s27, %s177_s27 }
  0x34   :  { %v128_v44 = vstv %s396_s18  ;;  %v125_v45 = vsel %vm123_vm5, %v124_v43, %v109_v37  ;;  %vm131_vm7 = vcmp.eq.s32.totalorder %v315_v0, 29  ;;  %v132_v47 = vstv %s404_s19  ;;  %p255_p13 = scmp.ne.s32.totalorder %s177_s27, %s254_s28  ;;  %p260_p1 = scmp.lt.s32.totalorder %s254_s28, %s254_s28 }
  0x35   :  { %v129_v46 = vsel %vm127_vm6, %v128_v44, %v113_v38  ;;  %v133_v48 = vsel %vm131_vm7, %v132_v47, %v117_v40  ;;  %vm135_vm8 = vcmp.eq.s32.totalorder %v315_v0, 6  ;;  %v136_v49 = vstv %s412_s20 }
  0x36   :  { %vm139_vm9 = vcmp.eq.s32.totalorder %v315_v0, 14  ;;  %v137_v50 = vsel %vm135_vm8, %v136_v49, %v121_v42  ;;  %v140_v51 = vstv %s420_s21  ;;  %vm143_vm10 = vcmp.eq.s32.totalorder %v315_v0, 22  ;;  %p261_p2 = por %p260_p1, %p259_p0 }
  0x37   :  { %v144_v52 = vstv %s422_s1  ;;  %v141_v53 = vsel %vm139_vm9, %v140_v51, %v125_v45  ;;  %vm147_vm11 = vcmp.eq.s32.totalorder %v315_v0, 30  ;;  %v148_v55 = vstv %s427_s22 }
  0x38   :  { %v145_v54 = vsel %vm143_vm10, %v144_v52, %v129_v46  ;;  %v149_v56 = vsel %vm147_vm11, %v148_v55, %v133_v48  ;;  %vm151_vm12 = vcmp.eq.s32.totalorder %v315_v0, 7  ;;  %v152_v57 = vstv %s432_s23  ;;  %p262_p3 = pnand %p261_p2, %p255_p13 }
  0x39   :  { %vm155_vm13 = vcmp.eq.s32.totalorder %v315_v0, 15  ;;  %v153_v58 = vsel %vm151_vm12, %v152_v57, %v137_v50  ;;  %v156_v59 = vstv %s436_s24  ;;  %vm159_vm14 = vcmp.eq.s32.totalorder %v315_v0, 23 }
  0x3a   :  { %v160_v60 = vstv %s438_s25  ;;  %v157_v61 = vsel %vm155_vm13, %v156_v59, %v141_v53  ;;  %vm163_vm15 = vcmp.eq.s32.totalorder %v315_v0, 31  ;;  %v164_v63 = vstv %s443_s26 }
  0x3b   :  { %v161_v62 = vsel %vm159_vm14, %v160_v60, %v145_v54  ;;  %v166_v1 = vadd.f32 %v157_v61, %v153_v58  ;;  %v165_v2 = vsel %vm163_vm15, %v164_v63, %v149_v56 }
  0x3d   :  { %v167_v3 = vadd.f32 %v166_v1, %v161_v62 }
  0x3f   :  { %v168_v4 = vadd.f32 %v167_v3, %v165_v2 }
  0x41   :  { %169 = vst [vmem:[#allocation7] sm:$0xff] %v168_v4 }
  0x42   :  { %265 = shalt.err (!%p262_p3)
}
  0x43   :  { %s266_s3 = scalar_lea.hbm %s480_s2, 128 }
  0x44   :  { %p267_p4 = scmp.ne.s32.totalorder %s480_s2, %s266_s3  ;;  %p270_p5 = scmp.lt.u32.totalorder %s266_s3, %s480_s2 }
  0x46   :  { %p272_p6 = pnand %p270_p5, %p267_p4 }
  0x48   :  { %275 = shalt.err (!%p272_p6)
}
  0x49   :  { %179 = dma.vmem_to_hbm [thread:$0]  %s177_s27, 128, %s480_s2, [#allocation4]  }
  0x4a   :  { %280 = dma.done.wait [#allocation4], 128  }
  0x4b   :  { %281 = vsyncadd [#allocation4], 4294967168 }
  0x4c   :  { %183 = vsyncpa [#allocation3], 1 }
  0x4d   :  { %184 = vsyncpa [#allocation4], 1 }
  0x4e   :  { %185 = vsyncpa [#allocation5], 1 }

</bundles_post_ra>
